<compile_context>
chip_gen: v5e
topology: v5e:2x2
jax: 0.10.0
libtpu: 0.0.40
codegen_flags: <defaults>
</compile_context>

<pallas_src>
import jax
import jax.numpy as jnp
from jax import lax
from jax.experimental import pallas as pl
from jax.experimental.pallas import tpu as pltpu

EPS_BN = 1e-5
EPS_LN = 1e-5
VMEM_LIMIT = 48 * 1024 * 1024  # fits v7x's 64 MiB physical VMEM with headroom


def _ceil_to(x, m):
    return ((x + m - 1) // m) * m


# ---------------------------------------------------------------------------
# Pallas kernels
# ---------------------------------------------------------------------------
def conv_mm_kernel(p_ref, w_ref, shift_ref, o_ref):
    """im2col matmul (bf16 x bf16 -> f32). BN scale is pre-folded into w;
    only the BN shift and Hardtanh(0,20) remain in-kernel. Output is
    lane-dense (Cout padded to 128)."""
    acc = jnp.dot(p_ref[...], w_ref[...], preferred_element_type=jnp.float32)
    o_ref[...] = jnp.clip(acc + shift_ref[...], 0.0, 20.0)


def xproj_kernel(x_ref, scale_ref, shift_ref, w_ref, b_ref, o_ref):
    """Fused BatchNorm1d(eval) + ReLU + (fwd||bwd) input-to-hidden GRU
    projection: one (tm, D) @ (D, 6H) matmul per tile."""
    act = jnp.maximum(x_ref[...] * scale_ref[...] + shift_ref[...], 0.0)
    y = jnp.dot(act.astype(jnp.bfloat16), w_ref[...],
                preferred_element_type=jnp.float32) + b_ref[...]
    o_ref[...] = y.astype(o_ref.dtype)


def gru_kernel(xg_ref, m_ref, whhT_ref, bhh_ref, o_ref, h_ref):
    """Bidirectional GRU recurrence, both directions in one kernel.

    xg_ref : (TC, 2, B, 3H) bf16  -- x @ W_ih^T + b_ih, [r|z|n], dir 0=fwd,
                                     dir 1=bwd (already time-reversed outside)
    m_ref  : (TC, B, 1)  f32      -- validity mask (pack_padded semantics)
    whhT   : (2, H, 3H) bf16, bhh : (2, 1, 3H) f32
    o_ref  : (TC, 2, B, H) f32
    h_ref  : (2, B, H) f32 VMEM scratch, carried across grid T-chunks.
    """
    H = o_ref.shape[-1]
    TC = xg_ref.shape[0]

    @pl.when(pl.program_id(0) == 0)
    def _():
        h_ref[...] = jnp.zeros(h_ref.shape, h_ref.dtype)

    whhT = whhT_ref[...]
    bhh = bhh_ref[...]

    def step(t, carry):
        h = h_ref[...]                                            # (2, B, H)
        # one batched (over direction) matmul covering all three gates
        hh = jnp.einsum("dbh,dhn->dbn", h.astype(jnp.bfloat16), whhT,
                        preferred_element_type=jnp.float32) + bhh  # (2, B, 3H)
        xg = xg_ref[t].astype(jnp.float32)                         # (2, B, 3H)
        r = jax.nn.sigmoid(xg[..., :H] + hh[..., :H])
        z = jax.nn.sigmoid(xg[..., H:2 * H] + hh[..., H:2 * H])
        n = jnp.tanh(xg[..., 2 * H:] + r * hh[..., 2 * H:])
        h_new = (1.0 - z) * n + z * h
        m = m_ref[t][None, :, :]                                   # (1, B, 1)
        h_ref[...] = m * h_new + (1.0 - m) * h
        o_ref[t] = (m * h_new).astype(o_ref.dtype)                 # pad -> zeros
        return carry

    lax.fori_loop(0, TC, step, 0, unroll=2)


def fc_kernel(x_ref, g_ref, b_ref, w_ref, o_ref):
    """LayerNorm over the last dim + bias-free Linear (lane-dense padded N)."""
    x = x_ref[...]
    mu = jnp.mean(x, axis=-1, keepdims=True)
    var = jnp.mean(jnp.square(x - mu), axis=-1, keepdims=True)
    y = (x - mu) * lax.rsqrt(var + EPS_LN) * g_ref[...] + b_ref[...]
    o_ref[...] = jnp.dot(y.astype(jnp.bfloat16), w_ref[...],
                         preferred_element_type=jnp.float32)


# ---------------------------------------------------------------------------
# Glue: im2col, length bookkeeping, per-length sequence reversal
# ---------------------------------------------------------------------------
def _im2col(x, kh, kw, sh, sw, ph, pw):
    # x: (B, C, H, W) -> patches (B*Hout*Wout, C*kh*kw), row-major (b, hout, wout),
    # contraction dim ordered (c_in, kh, kw) to match PyTorch Conv2d weights.
    # Patches are emitted in bf16 to halve the HBM traffic of the im2col buffer.
    # TODO(synk): move patch extraction into the kernel (index_map over
    #             overlapping windows) to avoid materializing the buffer at all.
    B, C, H, W = x.shape
    xp = jnp.pad(x.astype(jnp.bfloat16), ((0, 0), (0, 0), (ph, ph), (pw, pw)))
    Hout = (H + 2 * ph - kh) // sh + 1
    Wout = (W + 2 * pw - kw) // sw + 1
    hi = jnp.arange(Hout)[:, None] * sh + jnp.arange(kh)[None, :]      # (Hout, kh)
    wi = jnp.arange(Wout)[:, None] * sw + jnp.arange(kw)[None, :]      # (Wout, kw)
    g = xp[:, :, hi, :]                     # (B, C, Hout, kh, Wp)
    g = g[:, :, :, :, wi]                   # (B, C, Hout, kh, Wout, kw)
    g = g.transpose(0, 2, 4, 1, 3, 5)       # (B, Hout, Wout, C, kh, kw)
    return g.reshape(B * Hout * Wout, C * kh * kw), Hout, Wout


def conv_block(x, cp, kh, kw, stride, padding):
    """Conv2d(bias=False) + BatchNorm2d(eval) + Hardtanh(0,20) via tiled Pallas matmul."""
    B = x.shape[0]
    patches, Hout, Wout = _im2col(x, kh, kw, stride[0], stride[1], padding[0], padding[1])
    M, K = patches.shape
    Cp = cp["w"].shape[1]
    cout = cp["cout"]
    tm = min(256, _ceil_to(M, 8))
    Mp = _ceil_to(M, tm)
    patches = jnp.pad(patches, ((0, Mp - M), (0, 0)))

    out = pl.pallas_call(
        conv_mm_kernel,
        out_shape=jax.ShapeDtypeStruct((Mp, Cp), jnp.float32),
        grid=(Mp // tm,),
        in_specs=[
            pl.BlockSpec((tm, K), lambda i: (i, 0)),
            pl.BlockSpec((K, Cp), lambda i: (0, 0)),
            pl.BlockSpec((1, Cp), lambda i: (0, 0)),
        ],
        out_specs=pl.BlockSpec((tm, Cp), lambda i: (i, 0)),
        compiler_params=pltpu.CompilerParams(
            dimension_semantics=("parallel",),
            vmem_limit_bytes=VMEM_LIMIT),
    )(patches, cp["w"], cp["shift"])

    out = out[:M, :cout].reshape(B, Hout, Wout, cout).transpose(0, 3, 1, 2)
    return out                                                   # (B, Cout, Hout, Wout)


def transform_input_lengths(lengths):
    lengths = (lengths + 2 * 5 - 11) // 2 + 1     # conv1 time dim: k=11, s=2, p=5
    lengths = (lengths + 2 * 5 - 11) // 1 + 1     # conv2 time dim: k=11, s=1, p=5
    return lengths


def reverse_padded(x, lengths):
    # Reverse each sequence within its valid length (pack_padded_sequence reversal).
    # TODO(synk): fuse this into the GRU kernel via scalar-prefetched lengths to
    #             avoid two HBM gather round-trips per layer.
    T = x.shape[1]
    t = jnp.arange(T, dtype=jnp.int32)[None, :]
    ln = lengths[:, None].astype(jnp.int32)
    idx = jnp.where(t < ln, ln - 1 - t, t)                      # (B, T)
    idx = jnp.broadcast_to(idx[:, :, None], x.shape)
    return jnp.take_along_axis(x, idx, axis=1)


# ---------------------------------------------------------------------------
# RNN layer (BatchNorm1d + ReLU + bidirectional GRU)
# ---------------------------------------------------------------------------
def _xproj(xflat, bn_scale, bn_shift, w_ih_T, b_ih):
    M, D = xflat.shape
    N = w_ih_T.shape[1]
    tm = min(256, _ceil_to(M, 8))
    Mp = _ceil_to(M, tm)
    xp = jnp.pad(xflat, ((0, Mp - M), (0, 0)))
    out = pl.pallas_call(
        xproj_kernel,
        out_shape=jax.ShapeDtypeStruct((Mp, N), jnp.bfloat16),
        grid=(Mp // tm,),
        in_specs=[
            pl.BlockSpec((tm, D), lambda i: (i, 0)),
            pl.BlockSpec((1, D), lambda i: (0, 0)),
            pl.BlockSpec((1, D), lambda i: (0, 0)),
            pl.BlockSpec((D, N), lambda i: (0, 0)),
            pl.BlockSpec((1, N), lambda i: (0, 0)),
        ],
        out_specs=pl.BlockSpec((tm, N), lambda i: (i, 0)),
        compiler_params=pltpu.CompilerParams(
            dimension_semantics=("parallel",),
            vmem_limit_bytes=VMEM_LIMIT),
    )(xp, bn_scale, bn_shift, w_ih_T, b_ih)
    return out[:M]


def rnn_layer(x, lengths, lp):
    B, T, D = x.shape
    H = lp["H"]

    # One fused BN+ReLU+matmul covering both directions' input projections.
    xp = _xproj(x.reshape(B * T, D), lp["bn_scale"], lp["bn_shift"],
                lp["w_ih_T"], lp["b_ih"]).reshape(B, T, 6 * H)
    xp_f = xp[..., :3 * H]
    xp_b = reverse_padded(xp[..., 3 * H:], lengths)     # bwd direction: reversed input

    mask = (jnp.arange(T)[None, :] < lengths[:, None]).astype(jnp.float32)

    # Time-major, direction-stacked layout: (T, 2, B, 3H) / (T, B, 1)
    xg = jnp.stack([xp_f, xp_b], axis=0).transpose(2, 0, 1, 3)
    m = mask.T[:, :, None]

    TC = min(T, 32)
    Tp = _ceil_to(T, TC)
    if Tp != T:
        xg = jnp.pad(xg, ((0, Tp - T), (0, 0), (0, 0), (0, 0)))
        m = jnp.pad(m, ((0, Tp - T), (0, 0), (0, 0)))   # padded steps: mask=0

    out = pl.pallas_call(
        gru_kernel,
        out_shape=jax.ShapeDtypeStruct((Tp, 2, B, H), jnp.float32),
        grid=(Tp // TC,),
        in_specs=[
            pl.BlockSpec((TC, 2, B, 3 * H), lambda t: (t, 0, 0, 0)),
            pl.BlockSpec((TC, B, 1), lambda t: (t, 0, 0)),
            pl.BlockSpec((2, H, 3 * H), lambda t: (0, 0, 0)),
            pl.BlockSpec((2, 1, 3 * H), lambda t: (0, 0, 0)),
        ],
        out_specs=pl.BlockSpec((TC, 2, B, H), lambda t: (t, 0, 0, 0)),
        scratch_shapes=[pltpu.VMEM((2, B, H), jnp.float32)],
        compiler_params=pltpu.CompilerParams(
            dimension_semantics=("arbitrary",),        # h carried across T chunks
            vmem_limit_bytes=VMEM_LIMIT),
    )(xg, m, lp["w_hh_T"], lp["b_hh"])

    out = out[:T]
    out_f = out[:, 0].transpose(1, 0, 2)                              # (B, T, H)
    out_b = reverse_padded(out[:, 1].transpose(1, 0, 2), lengths)     # (B, T, H)
    return jnp.concatenate([out_f, out_b], axis=-1)                   # (B, T, 2H)


# ---------------------------------------------------------------------------
# Full model
# ---------------------------------------------------------------------------
def deepspeech2_forward(spectrogram, spectrogram_length, prep):
    # spectrogram: (B, n_feats, time)
    x = spectrogram[:, None, :, :].astype(jnp.float32)          # (B, 1, F, T) NCHW
    x = conv_block(x, prep["conv1"], kh=41, kw=11, stride=(2, 2), padding=(20, 5))
    x = conv_block(x, prep["conv2"], kh=21, kw=11, stride=(2, 1), padding=(10, 5))
    B, C, Fo, To = x.shape
    out = x.transpose(0, 3, 1, 2).reshape(B, To, C * Fo)        # (B, T', 32*F')
    out_lengths = transform_input_lengths(spectrogram_length)

    for lp in prep["rnn"]:
        out = rnn_layer(out, out_lengths, lp)

    # fc head: LayerNorm + Linear(bias=False), lane-dense padded output columns.
    B, T2, D2 = out.shape
    n_class = prep["n_class"]
    Np = prep["lin_wT"].shape[1]
    flat = out.reshape(B * T2, D2)
    M = flat.shape[0]
    tm = min(256, _ceil_to(M, 8))
    Mp = _ceil_to(M, tm)
    flat = jnp.pad(flat, ((0, Mp - M), (0, 0)))
    logits = pl.pallas_call(
        fc_kernel,
        out_shape=jax.ShapeDtypeStruct((Mp, Np), jnp.float32),
        grid=(Mp // tm,),
        in_specs=[
            pl.BlockSpec((tm, D2), lambda i: (i, 0)),
            pl.BlockSpec((1, D2), lambda i: (0, 0)),
            pl.BlockSpec((1, D2), lambda i: (0, 0)),
            pl.BlockSpec((D2, Np), lambda i: (0, 0)),
        ],
        out_specs=pl.BlockSpec((tm, Np), lambda i: (i, 0)),
        compiler_params=pltpu.CompilerParams(
            dimension_semantics=("parallel",),
            vmem_limit_bytes=VMEM_LIMIT),
    )(flat, prep["ln_g"], prep["ln_b"], prep["lin_wT"])
    return logits[:M, :n_class].reshape(B, T2, n_class)


# ---------------------------------------------------------------------------
# Parameter preparation (done once): fold BN into conv weights, concat/transposed
# GRU weights, pad outputs to lane-dense widths, cast matmul operands to bf16.
# ---------------------------------------------------------------------------
def prepare_params(params):
    prep = {}

    def conv_prep(w, g, b):
        Cout = w.shape[0]
        K = w.shape[1] * w.shape[2] * w.shape[3]
        scale = g / jnp.sqrt(1.0 + EPS_BN)               # BN eval, mean=0, var=1
        wflat = w.reshape(Cout, K).T * scale[None, :]    # fold BN scale into weight
        Cp = _ceil_to(Cout, 128)                         # lane-dense output
        wflat = jnp.pad(wflat, ((0, 0), (0, Cp - Cout))).astype(jnp.bfloat16)
        shift = jnp.pad(b, (0, Cp - Cout))[None, :].astype(jnp.float32)
        return {"w": wflat, "shift": shift, "cout": Cout}

    prep["conv1"] = conv_prep(params["conv1_w"], params["bn1_g"], params["bn1_b"])
    prep["conv2"] = conv_prep(params["conv2_w"], params["bn2_g"], params["bn2_b"])

    prep["rnn"] = []
    for lp in params["rnn"]:
        H = lp["H"]
        e = {"H": H,
             "bn_scale": (lp["bn_g"] / jnp.sqrt(1.0 + EPS_BN))[None, :],
             "bn_shift": lp["bn_b"][None, :]}
        w_ih = jnp.concatenate([lp["fwd"]["w_ih"], lp["bwd"]["w_ih"]], axis=0)   # (6H, D)
        e["w_ih_T"] = w_ih.T.astype(jnp.bfloat16)                                # (D, 6H)
        e["b_ih"] = jnp.concatenate([lp["fwd"]["b_ih"], lp["bwd"]["b_ih"]])[None, :]
        e["w_hh_T"] = jnp.stack([lp["fwd"]["w_hh"].T,
                                 lp["bwd"]["w_hh"].T]).astype(jnp.bfloat16)      # (2, H, 3H)
        e["b_hh"] = jnp.stack([lp["fwd"]["b_hh"], lp["bwd"]["b_hh"]])[:, None, :]  # (2, 1, 3H)
        prep["rnn"].append(e)

    n_class, D2 = params["linear_w"].shape
    Np = _ceil_to(n_class, 128)
    prep["ln_g"] = params["ln_g"][None, :]
    prep["ln_b"] = params["ln_b"][None, :]
    prep["lin_wT"] = jnp.pad(params["linear_w"].T,
                             ((0, 0), (0, Np - n_class))).astype(jnp.bfloat16)
    prep["n_class"] = n_class
    return prep


# ---------------------------------------------------------------------------
# Deterministic parameter initialization (matches __init__ shapes)
# ---------------------------------------------------------------------------
def init_params(key, n_feats, n_class, num_rnn_layers, rnn_hidden_dim, bidirectional=True):
    keys = iter(jax.random.split(key, 64))

    def u(shape, bound):
        return jax.random.uniform(next(keys), shape, jnp.float32, -bound, bound)

    H = rnn_hidden_dim
    p = {}
    p["conv1_w"] = u((32, 1, 41, 11), 1.0 / (1 * 41 * 11) ** 0.5)
    p["bn1_g"], p["bn1_b"] = jnp.ones((32,), jnp.float32), jnp.zeros((32,), jnp.float32)
    p["conv2_w"] = u((32, 32, 21, 11), 1.0 / (32 * 21 * 11) ** 0.5)
    p["bn2_g"], p["bn2_b"] = jnp.ones((32,), jnp.float32), jnp.zeros((32,), jnp.float32)

    f1 = (n_feats + 2 * 20 - 41) // 2 + 1
    f2 = (f1 + 2 * 10 - 21) // 2 + 1
    conv_out_dim = 32 * f2
    rnn_out = 2 * H if bidirectional else H

    p["rnn"] = []
    k = 1.0 / H ** 0.5
    for i in range(num_rnn_layers):
        D = conv_out_dim if i == 0 else rnn_out
        layer = {"H": H,
                 "bn_g": jnp.ones((D,), jnp.float32),
                 "bn_b": jnp.zeros((D,), jnp.float32)}
        for d in ("fwd", "bwd"):
            layer[d] = {"w_ih": u((3 * H, D), k), "w_hh": u((3 * H, H), k),
                        "b_ih": u((3 * H,), k), "b_hh": u((3 * H,), k)}
        p["rnn"].append(layer)

    p["ln_g"] = jnp.ones((rnn_out,), jnp.float32)
    p["ln_b"] = jnp.zeros((rnn_out,), jnp.float32)
    xb = (6.0 / (rnn_out + n_class)) ** 0.5                      # xavier_uniform
    p["linear_w"] = u((n_class, rnn_out), xb)
    return p


# ---------------------------------------------------------------------------
if __name__ == "__main__":
    B, n_feats, T = 2, 16, 20
    n_class = 8
    num_rnn_layers = 2
    rnn_hidden_dim = 32

    key = jax.random.PRNGKey(0)
    k_param, k_data = jax.random.split(key)
    params = init_params(k_param, n_feats, n_class, num_rnn_layers, rnn_hidden_dim)
    prep = prepare_params(params)

    spectrogram = jax.random.normal(k_data, (B, n_feats, T), jnp.float32)
    spectrogram_length = jnp.array([T, 15], dtype=jnp.int32)

    out = deepspeech2_forward(spectrogram, spectrogram_length, prep)
    out = jax.block_until_ready(out)
    T_out = int(transform_input_lengths(jnp.array([T], jnp.int32))[0])
    assert out.shape == (B, T_out, n_class), out.shape
    assert bool(jnp.all(jnp.isfinite(out)))
    print("KERNEL_OK")
</pallas_src>

<mosaic_0001>
module attributes {stable_mosaic.version = 11 : i64} {
  func.func @conv_mm_kernel(%arg0: i32, %arg1: memref<160x451xbf16, #tpu.memory_space<vmem>>, %arg2: memref<451x128xbf16, #tpu.memory_space<vmem>>, %arg3: memref<1x128xf32, #tpu.memory_space<vmem>>, %arg4: memref<160x128xf32, #tpu.memory_space<vmem>>) attributes {dimension_semantics = [#tpu.dimension_semantics<parallel>], iteration_bounds = array<i64: 1>, scalar_prefetch = 0 : i64, scratch_operands = 0 : i64, tpu.core_type = #tpu.core_type<tc>, window_params = [{transform_indices = @transform_0, window_bounds = array<i64: 160, 451>}, {pipeline_mode = #tpu.pipeline_mode<synchronous>, transform_indices = @transform_1, window_bounds = array<i64: 451, 128>}, {pipeline_mode = #tpu.pipeline_mode<synchronous>, transform_indices = @transform_2, window_bounds = array<i64: 1, 128>}, {transform_indices = @transform_3, window_bounds = array<i64: 160, 128>}]} {
    %c0 = arith.constant 0 : index
    %c0_0 = arith.constant 0 : index
    %0 = vector.load %arg1[%c0, %c0_0] : memref<160x451xbf16, #tpu.memory_space<vmem>>, vector<160x451xbf16>
    %c0_1 = arith.constant 0 : index
    %c0_2 = arith.constant 0 : index
    %1 = vector.load %arg2[%c0_1, %c0_2] : memref<451x128xbf16, #tpu.memory_space<vmem>>, vector<451x128xbf16>
    %cst = arith.constant dense<0.000000e+00> : vector<160x128xf32>
    %2 = tpu.matmul %0, %1, %cst {dimension_numbers = #tpu.dot_dimension_numbers<[1], [0], [0], [1], [0, 0, 1, 1], [], []>} : vector<160x451xbf16>, vector<451x128xbf16>, vector<160x128xf32> -> vector<160x128xf32>
    %c0_3 = arith.constant 0 : index
    %c0_4 = arith.constant 0 : index
    %3 = vector.load %arg3[%c0_3, %c0_4] : memref<1x128xf32, #tpu.memory_space<vmem>>, vector<1x128xf32>
    %4 = vector.broadcast %3 : vector<1x128xf32> to vector<160x128xf32>
    %5 = arith.addf %2, %4 : vector<160x128xf32>
    %cst_5 = arith.constant 0.000000e+00 : f32
    %cst_6 = arith.constant 2.000000e+01 : f32
    %6 = vector.broadcast %cst_5 : f32 to vector<160x128xf32>
    %7 = arith.maximumf %6, %5 : vector<160x128xf32>
    %8 = vector.broadcast %cst_6 : f32 to vector<160x128xf32>
    %9 = arith.minimumf %8, %7 : vector<160x128xf32>
    %c0_7 = arith.constant 0 : index
    %c0_8 = arith.constant 0 : index
    %10 = vector.load %arg4[%c0_7, %c0_8] : memref<160x128xf32, #tpu.memory_space<vmem>>, vector<160x128xf32>
    tpu.vector_store %arg4[%c0_7, %c0_8], %9 {strides = array<i32>} : memref<160x128xf32, #tpu.memory_space<vmem>>, vector<160x128xf32>,
    return
  }
  func.func @transform_0(%arg0: i32) -> (i32, i32) {
    %c0_i32 = arith.constant 0 : i32
    %c0_i32_0 = arith.constant 0 : i32
    return %arg0, %c0_i32 : i32, i32
  }
  func.func @transform_1(%arg0: i32) -> (i32, i32) {
    %c0_i32 = arith.constant 0 : i32
    %c0_i32_0 = arith.constant 0 : i32
    %c0_i32_1 = arith.constant 0 : i32
    return %c0_i32, %c0_i32_0 : i32, i32
  }
  func.func @transform_2(%arg0: i32) -> (i32, i32) {
    %c0_i32 = arith.constant 0 : i32
    %c0_i32_0 = arith.constant 0 : i32
    %c0_i32_1 = arith.constant 0 : i32
    return %c0_i32, %c0_i32_0 : i32, i32
  }
  func.func @transform_3(%arg0: i32) -> (i32, i32) {
    %c0_i32 = arith.constant 0 : i32
    %c0_i32_0 = arith.constant 0 : i32
    return %arg0, %c0_i32 : i32, i32
  }
}

</mosaic_0001>

<bundles_post_ra>
// kernel: tpu_custom_call.1
= control target key start
LH: loop header
LB: loop body
LE: loop exit
PB: predicated region body
PF: predicated region fallthrough
CT: control target
= control target key end

     0   :  { %8 = vsyncpa [#allocation3], 0  ;;  %s1377_s0 = inlined_call_operand.hbm [shape: bf16[160,451], index: 0, kind: input, shape index: {}]   ;;  %s1378_s1 = inlined_call_operand.hbm [shape: bf16[451,128], index: 1, kind: input, shape index: {}]   ;;  %s1379_s2 = inlined_call_operand.vmem [shape: f32[1,128], index: 2, kind: input, shape index: {}]   ;;  %s1380_s3 = inlined_call_operand.hbm [shape: f32[160,128], index: 3, kind: output, shape index: {}]  }
   0x1   :  { %9 = vsyncpa [#allocation6], 0 }
   0x2   :  { %10 = vsyncpa [#allocation4], 0  ;;  %s15_s14 = sshll.u32 %s1377_s0, 4  ;;  %s1303_s15 = smov [#allocation2]   ;;  %s16_s14 = int_to_ptr.hbm [resolvable:$true] %s15_s14 }
   0x3   :  { %s17_s16 = sshll.u32 %s1303_s15, 4  ;;  %s28_s19 = sshll.u32 %s1378_s1, 4  ;;  %s18_s16 = int_to_ptr.vmem [resolvable:$true] %s17_s16  ;;  %s29_s19 = int_to_ptr.hbm [resolvable:$true] %s28_s19 }
   0x4   :  { %s1304_s20 = smov 256   ;;  %s1305_s21 = smov 16  }
   0x5   :  { %23 = dma.hbm_to_vmem [thread:$0]  %s16_s14, 5120, %s18_s16, [#allocation3], %s1304_s20, %s1304_s20, %s1305_s21  }
   0x6   :  { %s1306_s22 = smov [#allocation5]   ;;  %s1307_s24 = smov 64  }
   0x7   :  { %s30_s23 = sshll.u32 %s1306_s22, 4  ;;  %s1308_s25 = smov 4   ;;  %s31_s23 = int_to_ptr.vmem [resolvable:$true] %s30_s23 }
   0x8   :  { %36 = dma.hbm_to_vmem [thread:$0]  %s29_s19, 3648, %s31_s23, [#allocation6], %s1307_s24, %s1307_s24, %s1308_s25  }
   0x9   :  { %1297 = dma.done.wait [#allocation3], 5120  }
   0xa   :  { %1298 = vsyncadd [#allocation3], 4294962176 }
   0xb   :  { %1299 = dma.done.wait [#allocation6], 3648  }
   0xc   :  { %1300 = vsyncadd [#allocation6], 4294963648  ;;  %vm541_vm0 = vcmask 1040384   ;;  %v1193_v0 = vld [vmem:[#allocation5 + $0x38] sm:$0xff]  ;;  %vm542_vm1 = vcmask 1041408   ;;  %v1309_v3 = vmov 65535  }
   0xd   :  { %v1201_v1 = vld [vmem:[#allocation5 + $0x78] sm:$0xff]  ;;  %v543_v4 = vsel %vm541_vm0, 4294967295, %v1309_v3  ;;  %548 = vmatpush.bf16.msra.mxu0 %v1193_v0  ;;  %v1192_v5 = vld [vmem:[#allocation5 + $0x30] sm:$0xff]  ;;  %v144_v7 = vld [vmem:[#allocation5 + $0xe0] sm:$0x3]  ;;  %vm510_vm2 = vcmask 547840  }
   0xe   :  { %v1209_v2 = vld [vmem:[#allocation5 + $0xb8] sm:$0xff]  ;;  %607 = vmatpush.bf16.msra.mxu1 %v1201_v1  ;;  %v1200_v6 = vld [vmem:[#allocation5 + $0x70] sm:$0xff]  ;;  %v452_v9 = vunpack.c.l.b16 %v144_v7  ;;  %v544_v10 = vsel %vm542_vm1, %v543_v4, 0  ;;  %v1191_v12 = vld [vmem:[#allocation5 + $0x28] sm:$0xff]  ;;  %s850_s29 = sshll.u32 %s1380_s3, 4  ;;  %s1311_s30 = smov 128   ;;  %s851_s29 = int_to_ptr.hbm [resolvable:$true] %s850_s29 }
   0xf   :  { %666 = vmatpush.bf16.msra.mxu2 %v1209_v2  ;;  %v1208_v8 = vld [vmem:[#allocation5 + $0xb0] sm:$0xff]  ;;  %v1199_v13 = vld [vmem:[#allocation5 + $0x68] sm:$0xff]  ;;  %v1213_v16 = vld [vmem:[#allocation5 + $0xd8] sm:$0xff]  ;;  %s1312_s4 = smov 8  }
  0x10   :  { %v481_v11 = vpack.c.b16 %v452_v9, %v452_v9  ;;  %v1207_v15 = vld [vmem:[#allocation5 + $0xa8] sm:$0xff]  ;;  %v1190_v17 = vld [vmem:[#allocation5 + $0x20] sm:$0xff]  ;;  %v1212_v20 = vld [vmem:[#allocation5 + $0xd0] sm:$0xff] }
  0x11   :  { %549 = vmatpush.bf16.msra.mxu0 %v1192_v5  ;;  %v1198_v18 = vld [vmem:[#allocation5 + $0x60] sm:$0xff]  ;;  %v1189_v21 = vld [vmem:[#allocation5 + $0x18] sm:$0xff]  ;;  %v1211_v24 = vld [vmem:[#allocation5 + $0xc8] sm:$0xff] }
  0x12   :  { %608 = vmatpush.bf16.msra.mxu1 %v1200_v6  ;;  %v546_v14 = vand.u32 %v544_v10, %v481_v11  ;;  %v1206_v19 = vld [vmem:[#allocation5 + $0xa0] sm:$0xff]  ;;  %v1197_v22 = vld [vmem:[#allocation5 + $0x58] sm:$0xff]  ;;  %v1188_v25 = vld [vmem:[#allocation5 + $0x10] sm:$0xff] }
  0x13   :  { %667 = vmatpush.bf16.msra.mxu2 %v1208_v8  ;;  %v1205_v23 = vld [vmem:[#allocation5 + $0x98] sm:$0xff]  ;;  %v1196_v26 = vld [vmem:[#allocation5 + $0x50] sm:$0xff]  ;;  %v1210_v28 = vld [vmem:[#allocation5 + $0xc0] sm:$0xff] }
  0x14   :  { %728 = vmatpush.bf16.msra.mxu3 %v546_v14  ;;  %v1204_v27 = vld [vmem:[#allocation5 + $0x90] sm:$0xff]  ;;  %v1147_v29 = vld [vmem:[#allocation2 + $0xc] sm:$0xf]  ;;  %v876_v30 = vld [vmem:[#allocation2 + $0x18] sm:$0xf0] }
  0x15   :  { %550 = vmatpush.bf16.msra.mxu0 %v1191_v12  ;;  %v1187_v31 = vld [vmem:[#allocation5 + $0x8] sm:$0xff]  ;;  %v879_v34 = vor.u32 %v1147_v29, %v876_v30  ;;  %v1186_v35 = vld [vmem:[#allocation5] sm:$0xff]  ;;  %v1148_v38 = vld [vmem:[#allocation2 + $0xc] sm:$0xf0] }
  0x16   :  { %609 = vmatpush.bf16.msra.mxu1 %v1199_v13  ;;  %v1195_v32 = vld [vmem:[#allocation5 + $0x48] sm:$0xff]  ;;  %v1194_v36 = vld [vmem:[#allocation5 + $0x40] sm:$0xff]  ;;  %v868_v40 = vld [vmem:[#allocation2 + $0x10] sm:$0xf0] }
  0x17   :  { %668 = vmatpush.bf16.msra.mxu2 %v1207_v15  ;;  %v1203_v33 = vld [vmem:[#allocation5 + $0x88] sm:$0xff]  ;;  %v866_v37 = vld [vmem:[#allocation2] sm:$0xf]  ;;  %v1146_v39 = vld [vmem:[#allocation2 + $0x4] sm:$0xf] }
  0x18   :  { %729 = vmatpush.bf16.msra.mxu3 %v1213_v16  ;;  %v1202_v41 = vld [vmem:[#allocation5 + $0x80] sm:$0xff]  ;;  %v874_v42 = vld [vmem:[#allocation2 + $0x8] sm:$0xf]  ;;  %v1149_v43 = vld [vmem:[#allocation2 + $0x14] sm:$0xf0]  ;;  %v867_v44 = vor.u32 %v1148_v38, %v866_v37  ;;  %v871_v45 = vor.u32 %v1146_v39, %v868_v40 }
  0x19   :  { %551 = vmatpush.bf16.msra.mxu0 %v1190_v17  ;;  %v875_v46 = vor.u32 %v1149_v43, %v874_v42  ;;  %v1151_v47 = vld [vmem:[#allocation2 + $0x2c] sm:$0xf]  ;;  %v892_v48 = vld [vmem:[#allocation2 + $0x38] sm:$0xf0]  ;;  %v882_v50 = vld [vmem:[#allocation2 + $0x20] sm:$0xf] }
  0x1a   :  { %610 = vmatpush.bf16.msra.mxu1 %v1198_v18  ;;  %v895_v49 = vor.u32 %v1151_v47, %v892_v48  ;;  %v1152_v51 = vld [vmem:[#allocation2 + $0x2c] sm:$0xf0]  ;;  %v1150_v52 = vld [vmem:[#allocation2 + $0x24] sm:$0xf]  ;;  %v884_v53 = vld [vmem:[#allocation2 + $0x30] sm:$0xf0] }
  0x1b   :  { %669 = vmatpush.bf16.msra.mxu2 %v1206_v19  ;;  %v890_v54 = vld [vmem:[#allocation2 + $0x28] sm:$0xf]  ;;  %v1153_v55 = vld [vmem:[#allocation2 + $0x34] sm:$0xf0]  ;;  %v883_v56 = vor.u32 %v1152_v51, %v882_v50  ;;  %v887_v57 = vor.u32 %v1150_v52, %v884_v53  ;;  %v1155_v59 = vld [vmem:[#allocation2 + $0x4c] sm:$0xf] }
  0x1c   :  { %730 = vmatpush.bf16.msra.mxu3 %v1212_v20  ;;  %v891_v58 = vor.u32 %v1153_v55, %v890_v54  ;;  %v908_v60 = vld [vmem:[#allocation2 + $0x58] sm:$0xf0]  ;;  %v898_v62 = vld [vmem:[#allocation2 + $0x40] sm:$0xf]  ;;  %v1156_v63 = vld [vmem:[#allocation2 + $0x4c] sm:$0xf0] }
  0x1d   :  { %552 = vmatpush.bf16.msra.mxu0 %v1189_v21  ;;  %v911_v61 = vor.u32 %v1155_v59, %v908_v60  ;;  %v1154_v0 = vld [vmem:[#allocation2 + $0x44] sm:$0xf]  ;;  %v900_v1 = vld [vmem:[#allocation2 + $0x50] sm:$0xf0]  ;;  %v906_v2 = vld [vmem:[#allocation2 + $0x48] sm:$0xf]  ;;  %v899_v4 = vor.u32 %v1156_v63, %v898_v62 }
  0x1e   :  { %611 = vmatpush.bf16.msra.mxu1 %v1197_v22  ;;  %v1157_v3 = vld [vmem:[#allocation2 + $0x54] sm:$0xf0]  ;;  %v903_v5 = vor.u32 %v1154_v0, %v900_v1  ;;  %v1159_v7 = vld [vmem:[#allocation2 + $0x6c] sm:$0xf]  ;;  %v924_v8 = vld [vmem:[#allocation2 + $0x78] sm:$0xf0] }
  0x1f   :  { %670 = vmatpush.bf16.msra.mxu2 %v1205_v23  ;;  %v907_v6 = vor.u32 %v1157_v3, %v906_v2  ;;  %v927_v9 = vor.u32 %v1159_v7, %v924_v8  ;;  %v914_v10 = vld [vmem:[#allocation2 + $0x60] sm:$0xf]  ;;  %v1160_v11 = vld [vmem:[#allocation2 + $0x6c] sm:$0xf0]  ;;  %v1158_v12 = vld [vmem:[#allocation2 + $0x64] sm:$0xf] }
  0x20   :  { %731 = vmatpush.bf16.msra.mxu3 %v1211_v24  ;;  %v916_v13 = vld [vmem:[#allocation2 + $0x70] sm:$0xf0]  ;;  %v922_v14 = vld [vmem:[#allocation2 + $0x68] sm:$0xf]  ;;  %v1161_v15 = vld [vmem:[#allocation2 + $0x74] sm:$0xf0]  ;;  %v915_v16 = vor.u32 %v1160_v11, %v914_v10 }
  0x21   :  { %553 = vmatpush.bf16.msra.mxu0 %v1188_v25  ;;  %v919_v17 = vor.u32 %v1158_v12, %v916_v13  ;;  %v923_v18 = vor.u32 %v1161_v15, %v922_v14  ;;  %v1163_v19 = vld [vmem:[#allocation2 + $0x8c] sm:$0xf]  ;;  %v940_v20 = vld [vmem:[#allocation2 + $0x98] sm:$0xf0]  ;;  %v930_v22 = vld [vmem:[#allocation2 + $0x80] sm:$0xf] }
  0x22   :  { %612 = vmatpush.bf16.msra.mxu1 %v1196_v26  ;;  %v943_v21 = vor.u32 %v1163_v19, %v940_v20  ;;  %v1164_v23 = vld [vmem:[#allocation2 + $0x8c] sm:$0xf0]  ;;  %v1162_v24 = vld [vmem:[#allocation2 + $0x84] sm:$0xf]  ;;  %v932_v25 = vld [vmem:[#allocation2 + $0x90] sm:$0xf0] }
  0x23   :  { %671 = vmatpush.bf16.msra.mxu2 %v1204_v27  ;;  %v938_v26 = vld [vmem:[#allocation2 + $0x88] sm:$0xf]  ;;  %v1165_v27 = vld [vmem:[#allocation2 + $0x94] sm:$0xf0]  ;;  %v935_v29 = vor.u32 %v1162_v24, %v932_v25  ;;  %v948_v37 = vld [vmem:[#allocation2 + $0xb0] sm:$0xf0] }
  0x24   :  { %732 = vmatpush.bf16.msra.mxu3 %v1210_v28  ;;  %v931_v28 = vor.u32 %v1164_v23, %v930_v22  ;;  %v939_v30 = vor.u32 %v1165_v27, %v938_v26  ;;  %v954_v38 = vld [vmem:[#allocation2 + $0xa8] sm:$0xf]  ;;  %v1169_v39 = vld [vmem:[#allocation2 + $0xb4] sm:$0xf0]  ;;  %v1171_v43 = vld [vmem:[#allocation2 + $0xcc] sm:$0xf] }
  0x25   :  { %554 = vmatpush.bf16.msra.mxu0 %v1187_v31  ;;  %v1167_v31 = vld [vmem:[#allocation2 + $0xac] sm:$0xf]  ;;  %v955_v42 = vor.u32 %v1169_v39, %v954_v38  ;;  %v1172_v47 = vld [vmem:[#allocation2 + $0xcc] sm:$0xf0]  ;;  %v1170_v48 = vld [vmem:[#allocation2 + $0xc4] sm:$0xf] }
  0x26   :  { %613 = vmatpush.bf16.msra.mxu1 %v1195_v32  ;;  %v956_v32 = vld [vmem:[#allocation2 + $0xb8] sm:$0xf0]  ;;  %v970_v50 = vld [vmem:[#allocation2 + $0xc8] sm:$0xf]  ;;  %v1173_v51 = vld [vmem:[#allocation2 + $0xd4] sm:$0xf0] }
  0x27   :  { %672 = vmatpush.bf16.msra.mxu2 %v1203_v33  ;;  %1136 = vmatmul.msk.bf16.vlgmr.msra.gmra.mxu3 %vm510_vm2, %v879_v34  ;;  %v959_v33 = vor.u32 %v1167_v31, %v956_v32  ;;  %v946_v34 = vld [vmem:[#allocation2 + $0xa0] sm:$0xf]  ;;  %v971_v54 = vor.u32 %v1173_v51, %v970_v50  ;;  %v1175_v55 = vld [vmem:[#allocation2 + $0xec] sm:$0xf]  ;;  %v1176_v59 = vld [vmem:[#allocation2 + $0xec] sm:$0xf0] }
  0x28   :  { %v1174_v60 = vld [vmem:[#allocation2 + $0xe4] sm:$0xf]  ;;  %v986_v62 = vld [vmem:[#allocation2 + $0xe8] sm:$0xf]  ;;  %v1177_v63 = vld [vmem:[#allocation2 + $0xf4] sm:$0xf0] }
  0x29   :  { %555 = vmatpush.bf16.msra.mxu0 %v1186_v35  ;;  %v1168_v35 = vld [vmem:[#allocation2 + $0xac] sm:$0xf0]  ;;  %v987_v2 = vor.u32 %v1177_v63, %v986_v62  ;;  %v1179_v3 = vld [vmem:[#allocation2 + $0x10c] sm:$0xf]  ;;  %v1178_v8 = vld [vmem:[#allocation2 + $0x104] sm:$0xf] }
  0x2a   :  { %614 = vmatpush.bf16.msra.mxu1 %v1194_v36  ;;  %v1166_v36 = vld [vmem:[#allocation2 + $0xa4] sm:$0xf]  ;;  %v947_v40 = vor.u32 %v1168_v35, %v946_v34  ;;  %v1180_v7 = vld [vmem:[#allocation2 + $0x10c] sm:$0xf0]  ;;  %v1350_v10 = vld [vmem:[%s1379_s2] ss:$0 sm:$0xff] }
  0x2b   :  { %673 = vmatpush.bf16.msra.mxu2 %v1202_v41  ;;  %v951_v41 = vor.u32 %v1166_v36, %v948_v37  ;;  %v1002_v11 = vld [vmem:[#allocation2 + $0x108] sm:$0xf]  ;;  %v1181_v12 = vld [vmem:[#allocation2 + $0x114] sm:$0xf0]  ;;  %v1183_v22 = vld [vmem:[#allocation2 + $0x12c] sm:$0xf] }
  0x2c   :  { %556 = vmatmul.bf16.vlgmr.msra.gmra.mxu0 %v867_v44  ;;  %v972_v44 = vld [vmem:[#allocation2 + $0xd8] sm:$0xf0]  ;;  %v1010_v31 = vld [vmem:[#allocation2 + $0x120] sm:$0xf]  ;;  %v1184_v32 = vld [vmem:[#allocation2 + $0x12c] sm:$0xf0] }
  0x2d   :  { %615 = vmatmul.bf16.vlgmr.msra.gmra.mxu1 %v871_v45  ;;  %v975_v45 = vor.u32 %v1171_v43, %v972_v44  ;;  %v1020_v23 = vld [vmem:[#allocation2 + $0x138] sm:$0xf0]  ;;  %v1182_v34 = vld [vmem:[#allocation2 + $0x124] sm:$0xf]  ;;  %v1012_v35 = vld [vmem:[#allocation2 + $0x130] sm:$0xf0] }
  0x2e   :  { %674 = vmatmul.bf16.vlgmr.msra.gmra.mxu2 %v875_v46  ;;  %v962_v46 = vld [vmem:[#allocation2 + $0xc0] sm:$0xf]  ;;  %v1018_v36 = vld [vmem:[#allocation2 + $0x128] sm:$0xf]  ;;  %v1185_v37 = vld [vmem:[#allocation2 + $0x134] sm:$0xf0] }
  0x2f   :  { %v963_v52 = vor.u32 %v1172_v47, %v962_v46  ;;  %v1019_v46 = vor.u32 %v1185_v37, %v1018_v36  ;;  %s1310_s2 = smov [#allocation7]  }
  0x30   :  { %s848_s26 = sshll.u32 %s1310_s2, 4  ;;  %s849_s26 = int_to_ptr.vmem [resolvable:$true] %s848_s26 }
  0x37   :  { %1137 = vmatmul.msk.bf16.gmra.mxu3 %vm510_vm2, %v895_v49  ;;  %v964_v49 = vld [vmem:[#allocation2 + $0xd0] sm:$0xf0] }
  0x38   :  { %v967_v53 = vor.u32 %v1170_v48, %v964_v49 }
  0x3c   :  { %561 = vmatmul.bf16.gmra.mxu0 %v883_v56  ;;  %v988_v56 = vld [vmem:[#allocation2 + $0xf8] sm:$0xf0] }
  0x3d   :  { %620 = vmatmul.bf16.gmra.mxu1 %v887_v57  ;;  %v991_v57 = vor.u32 %v1175_v55, %v988_v56 }
  0x3e   :  { %679 = vmatmul.bf16.gmra.mxu2 %v891_v58  ;;  %v978_v58 = vld [vmem:[#allocation2 + $0xe0] sm:$0xf] }
  0x3f   :  { %v979_v0 = vor.u32 %v1176_v59, %v978_v58 }
  0x47   :  { %1138 = vmatmul.msk.bf16.gmra.mxu3 %vm510_vm2, %v911_v61  ;;  %v980_v61 = vld [vmem:[#allocation2 + $0xf0] sm:$0xf0] }
  0x48   :  { %v983_v1 = vor.u32 %v1174_v60, %v980_v61 }
  0x4c   :  { %566 = vmatmul.bf16.gmra.mxu0 %v899_v4  ;;  %v1004_v4 = vld [vmem:[#allocation2 + $0x118] sm:$0xf0] }
  0x4d   :  { %625 = vmatmul.bf16.gmra.mxu1 %v903_v5  ;;  %v1007_v5 = vor.u32 %v1179_v3, %v1004_v4 }
  0x4e   :  { %684 = vmatmul.bf16.gmra.mxu2 %v907_v6  ;;  %v994_v6 = vld [vmem:[#allocation2 + $0x100] sm:$0xf] }
  0x4f   :  { %v995_v13 = vor.u32 %v1180_v7, %v994_v6 }
  0x57   :  { %1139 = vmatmul.msk.bf16.gmra.mxu3 %vm510_vm2, %v927_v9  ;;  %v996_v9 = vld [vmem:[#allocation2 + $0x110] sm:$0xf0] }
  0x58   :  { %v999_v14 = vor.u32 %v1178_v8, %v996_v9 }
  0x5c   :  { %571 = vmatmul.bf16.gmra.mxu0 %v915_v16 }
  0x5d   :  { %630 = vmatmul.bf16.gmra.mxu1 %v919_v17  ;;  %v1003_v17 = vor.u32 %v1181_v12, %v1002_v11 }
  0x5e   :  { %689 = vmatmul.bf16.gmra.mxu2 %v923_v18 }
  0x67   :  { %1140 = vmatmul.msk.bf16.gmra.mxu3 %vm510_vm2, %v943_v21 }
  0x6c   :  { %576 = vmatmul.bf16.gmra.mxu0 %v931_v28 }
  0x6d   :  { %635 = vmatmul.bf16.gmra.mxu1 %v935_v29 }
  0x6e   :  { %694 = vmatmul.bf16.gmra.mxu2 %v939_v30  ;;  %v1023_v30 = vor.u32 %v1183_v22, %v1020_v23 }
  0x77   :  { %1141 = vmatmul.msk.bf16.gmra.mxu3 %vm510_vm2, %v959_v33 }
  0x7c   :  { %581 = vmatmul.bf16.gmra.mxu0 %v947_v40 }
  0x7d   :  { %640 = vmatmul.bf16.gmra.mxu1 %v951_v41  ;;  %v1011_v41 = vor.u32 %v1184_v32, %v1010_v31 }
  0x7e   :  { %699 = vmatmul.bf16.gmra.mxu2 %v955_v42  ;;  %v1015_v42 = vor.u32 %v1182_v34, %v1012_v35 }
  0x87   :  { %1142 = vmatmul.msk.bf16.gmra.mxu3 %vm510_vm2, %v975_v45 }
  0x8c   :  { %586 = vmatmul.bf16.gmra.mxu0 %v963_v52 }
  0x8d   :  { %645 = vmatmul.bf16.gmra.mxu1 %v967_v53 }
  0x8e   :  { %704 = vmatmul.bf16.gmra.mxu2 %v971_v54 }
  0x97   :  { %1143 = vmatmul.msk.bf16.gmra.mxu3 %vm510_vm2, %v991_v57 }
  0x9c   :  { %591 = vmatmul.bf16.gmra.mxu0 %v979_v0 }
  0x9d   :  { %650 = vmatmul.bf16.gmra.mxu1 %v983_v1 }
  0x9e   :  { %709 = vmatmul.bf16.gmra.mxu2 %v987_v2 }
  0xa7   :  { %1144 = vmatmul.msk.bf16.gmra.mxu3 %vm510_vm2, %v1007_v5 }
  0xa9   :  { %v557_v15 = vpop.f32.mrf.mxu0 }
  0xaa   :  { %v616_v16 = vpop.f32.mrf.mxu1  ;;  %v558_v18 = vadd.f32 %v1350_v10, %v557_v15  ;;  %v734_v19 = vpop.f32.mrf.mxu3 }
  0xac   :  { %596 = vmatmul.bf16.gmra.mxu0 %v995_v13  ;;  %v617_v20 = vadd.f32 %v616_v16, %v558_v18 }
  0xad   :  { %655 = vmatmul.bf16.gmra.mxu1 %v999_v14 }
  0xae   :  { %714 = vmatmul.bf16.gmra.mxu2 %v1003_v17 }
  0xb1   :  { %v675_v21 = vpop.f32.mrf.mxu2  ;;  %v559_v25 = vpop.f32.mrf.mxu0 }
  0xb2   :  { %v676_v24 = vadd.f32 %v675_v21, %v617_v20  ;;  %v618_v26 = vpop.f32.mrf.mxu1  ;;  %v736_v27 = vpop.f32.mrf.mxu3  ;;  %v560_v29 = vadd.f32 %v1350_v10, %v559_v25 }
  0xb4   :  { %v735_v28 = vadd.f32 %v734_v19, %v676_v24  ;;  %v619_v39 = vadd.f32 %v618_v26, %v560_v29 }
  0xb6   :  { %v784_v33 = vmax.f32 %v735_v28, 0.0 }
  0xb7   :  { %1145 = vmatmul.msk.bf16.gmra.mxu3 %vm510_vm2, %v1023_v30 }
  0xb8   :  { %v804_v38 = vmin.f32 %v784_v33, 20.0 }
  0xb9   :  { %v677_v40 = vpop.f32.mrf.mxu2  ;;  %v562_v44 = vpop.f32.mrf.mxu0 }
  0xba   :  { %824 = vst [vmem:[#allocation7] sm:$0xff] %v804_v38  ;;  %v678_v43 = vadd.f32 %v677_v40, %v619_v39  ;;  %v621_v45 = vpop.f32.mrf.mxu1  ;;  %v563_v47 = vadd.f32 %v1350_v10, %v562_v44  ;;  %v739_v48 = vpop.f32.mrf.mxu3 }
  0xbc   :  { %v737_v49 = vadd.f32 %v736_v27, %v678_v43  ;;  %601 = vmatmul.bf16.gmra.mxu0 %v1011_v41  ;;  %v622_v51 = vadd.f32 %v621_v45, %v563_v47 }
  0xbd   :  { %660 = vmatmul.bf16.gmra.mxu1 %v1015_v42 }
  0xbe   :  { %v785_v50 = vmax.f32 %v737_v49, 0.0  ;;  %719 = vmatmul.bf16.gmra.mxu2 %v1019_v46 }
  0xc0   :  { %v805_v52 = vmin.f32 %v785_v50, 20.0 }
  0xc1   :  { %v680_v53 = vpop.f32.mrf.mxu2  ;;  %v564_v55 = vpop.f32.mrf.mxu0 }
  0xc2   :  { %825 = vst [vmem:[#allocation7 + $0x8] sm:$0xff] %v805_v52  ;;  %v681_v54 = vadd.f32 %v680_v53, %v622_v51  ;;  %v623_v56 = vpop.f32.mrf.mxu1  ;;  %v741_v57 = vpop.f32.mrf.mxu3  ;;  %v565_v59 = vadd.f32 %v1350_v10, %v564_v55 }
  0xc4   :  { %v740_v58 = vadd.f32 %v739_v48, %v681_v54  ;;  %v624_v62 = vadd.f32 %v623_v56, %v565_v59 }
  0xc6   :  { %v786_v60 = vmax.f32 %v740_v58, 0.0 }
  0xc8   :  { %v806_v61 = vmin.f32 %v786_v60, 20.0 }
  0xc9   :  { %v682_v63 = vpop.f32.mrf.mxu2  ;;  %v567_v1 = vpop.f32.mrf.mxu0 }
  0xca   :  { %826 = vst [vmem:[#allocation7 + $0x10] sm:$0xff] %v806_v61  ;;  %v683_v0 = vadd.f32 %v682_v63, %v624_v62  ;;  %v626_v2 = vpop.f32.mrf.mxu1  ;;  %v568_v3 = vadd.f32 %v1350_v10, %v567_v1  ;;  %v744_v4 = vpop.f32.mrf.mxu3 }
  0xcc   :  { %v742_v5 = vadd.f32 %v741_v57, %v683_v0  ;;  %v627_v7 = vadd.f32 %v626_v2, %v568_v3 }
  0xce   :  { %v787_v6 = vmax.f32 %v742_v5, 0.0 }
  0xd0   :  { %v807_v8 = vmin.f32 %v787_v6, 20.0 }
  0xd1   :  { %v685_v9 = vpop.f32.mrf.mxu2  ;;  %v569_v12 = vpop.f32.mrf.mxu0 }
  0xd2   :  { %827 = vst [vmem:[#allocation7 + $0x18] sm:$0xff] %v807_v8  ;;  %v686_v11 = vadd.f32 %v685_v9, %v627_v7  ;;  %v628_v13 = vpop.f32.mrf.mxu1  ;;  %v746_v14 = vpop.f32.mrf.mxu3  ;;  %v570_v16 = vadd.f32 %v1350_v10, %v569_v12 }
  0xd4   :  { %v745_v15 = vadd.f32 %v744_v4, %v686_v11  ;;  %v629_v19 = vadd.f32 %v628_v13, %v570_v16 }
  0xd6   :  { %v788_v17 = vmax.f32 %v745_v15, 0.0 }
  0xd8   :  { %v808_v18 = vmin.f32 %v788_v17, 20.0 }
  0xd9   :  { %v687_v20 = vpop.f32.mrf.mxu2  ;;  %v572_v22 = vpop.f32.mrf.mxu0 }
  0xda   :  { %828 = vst [vmem:[#allocation7 + $0x20] sm:$0xff] %v808_v18  ;;  %v688_v21 = vadd.f32 %v687_v20, %v629_v19  ;;  %v631_v23 = vpop.f32.mrf.mxu1  ;;  %v573_v24 = vadd.f32 %v1350_v10, %v572_v22  ;;  %v749_v25 = vpop.f32.mrf.mxu3 }
  0xdc   :  { %v747_v26 = vadd.f32 %v746_v14, %v688_v21  ;;  %v632_v28 = vadd.f32 %v631_v23, %v573_v24 }
  0xde   :  { %v789_v27 = vmax.f32 %v747_v26, 0.0 }
  0xe0   :  { %v809_v29 = vmin.f32 %v789_v27, 20.0 }
  0xe1   :  { %v690_v30 = vpop.f32.mrf.mxu2  ;;  %v574_v32 = vpop.f32.mrf.mxu0 }
  0xe2   :  { %829 = vst [vmem:[#allocation7 + $0x28] sm:$0xff] %v809_v29  ;;  %v691_v31 = vadd.f32 %v690_v30, %v632_v28  ;;  %v633_v33 = vpop.f32.mrf.mxu1  ;;  %v751_v34 = vpop.f32.mrf.mxu3  ;;  %v575_v36 = vadd.f32 %v1350_v10, %v574_v32 }
  0xe4   :  { %v750_v35 = vadd.f32 %v749_v25, %v691_v31  ;;  %v634_v39 = vadd.f32 %v633_v33, %v575_v36 }
  0xe6   :  { %v790_v37 = vmax.f32 %v750_v35, 0.0 }
  0xe8   :  { %v810_v38 = vmin.f32 %v790_v37, 20.0 }
  0xe9   :  { %v692_v40 = vpop.f32.mrf.mxu2  ;;  %v577_v42 = vpop.f32.mrf.mxu0 }
  0xea   :  { %830 = vst [vmem:[#allocation7 + $0x30] sm:$0xff] %v810_v38  ;;  %v693_v41 = vadd.f32 %v692_v40, %v634_v39  ;;  %v636_v43 = vpop.f32.mrf.mxu1  ;;  %v578_v44 = vadd.f32 %v1350_v10, %v577_v42  ;;  %v754_v45 = vpop.f32.mrf.mxu3 }
  0xec   :  { %v752_v46 = vadd.f32 %v751_v34, %v693_v41  ;;  %v637_v48 = vadd.f32 %v636_v43, %v578_v44 }
  0xee   :  { %v791_v47 = vmax.f32 %v752_v46, 0.0 }
  0xf0   :  { %v811_v49 = vmin.f32 %v791_v47, 20.0 }
  0xf1   :  { %v695_v50 = vpop.f32.mrf.mxu2  ;;  %v579_v52 = vpop.f32.mrf.mxu0 }
  0xf2   :  { %831 = vst [vmem:[#allocation7 + $0x38] sm:$0xff] %v811_v49  ;;  %v696_v51 = vadd.f32 %v695_v50, %v637_v48  ;;  %v638_v53 = vpop.f32.mrf.mxu1  ;;  %v756_v54 = vpop.f32.mrf.mxu3  ;;  %v580_v56 = vadd.f32 %v1350_v10, %v579_v52 }
  0xf4   :  { %v755_v55 = vadd.f32 %v754_v45, %v696_v51  ;;  %v639_v59 = vadd.f32 %v638_v53, %v580_v56 }
  0xf6   :  { %v792_v57 = vmax.f32 %v755_v55, 0.0 }
  0xf8   :  { %v812_v58 = vmin.f32 %v792_v57, 20.0 }
  0xf9   :  { %v697_v60 = vpop.f32.mrf.mxu2  ;;  %v582_v62 = vpop.f32.mrf.mxu0 }
  0xfa   :  { %832 = vst [vmem:[#allocation7 + $0x40] sm:$0xff] %v812_v58  ;;  %v698_v61 = vadd.f32 %v697_v60, %v639_v59  ;;  %v641_v63 = vpop.f32.mrf.mxu1  ;;  %v583_v0 = vadd.f32 %v1350_v10, %v582_v62  ;;  %v759_v1 = vpop.f32.mrf.mxu3 }
  0xfc   :  { %v757_v2 = vadd.f32 %v756_v54, %v698_v61  ;;  %v642_v4 = vadd.f32 %v641_v63, %v583_v0 }
  0xfe   :  { %v793_v3 = vmax.f32 %v757_v2, 0.0 }
 0x100   :  { %v813_v5 = vmin.f32 %v793_v3, 20.0 }
 0x101   :  { %v700_v6 = vpop.f32.mrf.mxu2  ;;  %v584_v8 = vpop.f32.mrf.mxu0 }
 0x102   :  { %833 = vst [vmem:[#allocation7 + $0x48] sm:$0xff] %v813_v5  ;;  %v701_v7 = vadd.f32 %v700_v6, %v642_v4  ;;  %v643_v9 = vpop.f32.mrf.mxu1  ;;  %v761_v11 = vpop.f32.mrf.mxu3  ;;  %v585_v13 = vadd.f32 %v1350_v10, %v584_v8 }
 0x104   :  { %v760_v12 = vadd.f32 %v759_v1, %v701_v7  ;;  %v644_v16 = vadd.f32 %v643_v9, %v585_v13 }
 0x106   :  { %v794_v14 = vmax.f32 %v760_v12, 0.0 }
 0x108   :  { %v814_v15 = vmin.f32 %v794_v14, 20.0 }
 0x109   :  { %v702_v17 = vpop.f32.mrf.mxu2  ;;  %v587_v19 = vpop.f32.mrf.mxu0 }
 0x10a   :  { %834 = vst [vmem:[#allocation7 + $0x50] sm:$0xff] %v814_v15  ;;  %v703_v18 = vadd.f32 %v702_v17, %v644_v16  ;;  %v646_v20 = vpop.f32.mrf.mxu1  ;;  %v588_v21 = vadd.f32 %v1350_v10, %v587_v19  ;;  %v764_v22 = vpop.f32.mrf.mxu3 }
 0x10c   :  { %v762_v23 = vadd.f32 %v761_v11, %v703_v18  ;;  %v647_v25 = vadd.f32 %v646_v20, %v588_v21 }
 0x10e   :  { %v795_v24 = vmax.f32 %v762_v23, 0.0 }
 0x110   :  { %v815_v26 = vmin.f32 %v795_v24, 20.0 }
 0x111   :  { %v705_v27 = vpop.f32.mrf.mxu2  ;;  %v589_v29 = vpop.f32.mrf.mxu0 }
 0x112   :  { %835 = vst [vmem:[#allocation7 + $0x58] sm:$0xff] %v815_v26  ;;  %v706_v28 = vadd.f32 %v705_v27, %v647_v25  ;;  %v648_v30 = vpop.f32.mrf.mxu1  ;;  %v766_v31 = vpop.f32.mrf.mxu3  ;;  %v590_v33 = vadd.f32 %v1350_v10, %v589_v29 }
 0x114   :  { %v765_v32 = vadd.f32 %v764_v22, %v706_v28  ;;  %v649_v36 = vadd.f32 %v648_v30, %v590_v33 }
 0x116   :  { %v796_v34 = vmax.f32 %v765_v32, 0.0 }
 0x118   :  { %v816_v35 = vmin.f32 %v796_v34, 20.0 }
 0x119   :  { %v707_v37 = vpop.f32.mrf.mxu2  ;;  %v592_v39 = vpop.f32.mrf.mxu0 }
 0x11a   :  { %836 = vst [vmem:[#allocation7 + $0x60] sm:$0xff] %v816_v35  ;;  %v708_v38 = vadd.f32 %v707_v37, %v649_v36  ;;  %v651_v40 = vpop.f32.mrf.mxu1  ;;  %v593_v41 = vadd.f32 %v1350_v10, %v592_v39  ;;  %v769_v42 = vpop.f32.mrf.mxu3 }
 0x11c   :  { %v767_v43 = vadd.f32 %v766_v31, %v708_v38  ;;  %v652_v45 = vadd.f32 %v651_v40, %v593_v41 }
 0x11e   :  { %v797_v44 = vmax.f32 %v767_v43, 0.0 }
 0x120   :  { %v817_v46 = vmin.f32 %v797_v44, 20.0 }
 0x121   :  { %v710_v47 = vpop.f32.mrf.mxu2  ;;  %v594_v49 = vpop.f32.mrf.mxu0 }
 0x122   :  { %837 = vst [vmem:[#allocation7 + $0x68] sm:$0xff] %v817_v46  ;;  %v711_v48 = vadd.f32 %v710_v47, %v652_v45  ;;  %v653_v50 = vpop.f32.mrf.mxu1  ;;  %v771_v51 = vpop.f32.mrf.mxu3  ;;  %v595_v53 = vadd.f32 %v1350_v10, %v594_v49 }
 0x124   :  { %v770_v52 = vadd.f32 %v769_v42, %v711_v48  ;;  %v654_v56 = vadd.f32 %v653_v50, %v595_v53 }
 0x126   :  { %v798_v54 = vmax.f32 %v770_v52, 0.0 }
 0x128   :  { %v818_v55 = vmin.f32 %v798_v54, 20.0 }
 0x129   :  { %v712_v57 = vpop.f32.mrf.mxu2  ;;  %v597_v59 = vpop.f32.mrf.mxu0 }
 0x12a   :  { %838 = vst [vmem:[#allocation7 + $0x70] sm:$0xff] %v818_v55  ;;  %v713_v58 = vadd.f32 %v712_v57, %v654_v56  ;;  %v656_v60 = vpop.f32.mrf.mxu1  ;;  %v598_v61 = vadd.f32 %v1350_v10, %v597_v59  ;;  %v774_v63 = vpop.f32.mrf.mxu3 }
 0x12c   :  { %v772_v62 = vadd.f32 %v771_v51, %v713_v58  ;;  %v657_v1 = vadd.f32 %v656_v60, %v598_v61 }
 0x12e   :  { %v799_v0 = vmax.f32 %v772_v62, 0.0 }
 0x130   :  { %v819_v2 = vmin.f32 %v799_v0, 20.0 }
 0x131   :  { %v715_v3 = vpop.f32.mrf.mxu2  ;;  %v599_v5 = vpop.f32.mrf.mxu0 }
 0x132   :  { %839 = vst [vmem:[#allocation7 + $0x78] sm:$0xff] %v819_v2  ;;  %v716_v4 = vadd.f32 %v715_v3, %v657_v1  ;;  %v658_v6 = vpop.f32.mrf.mxu1  ;;  %v600_v8 = vadd.f32 %v1350_v10, %v599_v5  ;;  %v776_v11 = vpop.f32.mrf.mxu3 }
 0x134   :  { %v775_v7 = vadd.f32 %v774_v63, %v716_v4  ;;  %v659_v13 = vadd.f32 %v658_v6, %v600_v8 }
 0x136   :  { %v800_v9 = vmax.f32 %v775_v7, 0.0 }
 0x138   :  { %v820_v12 = vmin.f32 %v800_v9, 20.0 }
 0x139   :  { %v717_v14 = vpop.f32.mrf.mxu2  ;;  %v602_v16 = vpop.f32.mrf.mxu0 }
 0x13a   :  { %840 = vst [vmem:[#allocation7 + $0x80] sm:$0xff] %v820_v12  ;;  %v718_v15 = vadd.f32 %v717_v14, %v659_v13  ;;  %v603_v17 = vadd.f32 %v1350_v10, %v602_v16  ;;  %v661_v19 = vpop.f32.mrf.mxu1  ;;  %v779_v23 = vpop.f32.mrf.mxu3 }
 0x13c   :  { %v777_v18 = vadd.f32 %v776_v11, %v718_v15  ;;  %v662_v21 = vadd.f32 %v661_v19, %v603_v17 }
 0x13e   :  { %v801_v20 = vmax.f32 %v777_v18, 0.0 }
 0x140   :  { %v821_v22 = vmin.f32 %v801_v20, 20.0 }
 0x141   :  { %v720_v24 = vpop.f32.mrf.mxu2  ;;  %v604_v26 = vpop.f32.mrf.mxu0 }
 0x142   :  { %841 = vst [vmem:[#allocation7 + $0x88] sm:$0xff] %v821_v22  ;;  %v721_v25 = vadd.f32 %v720_v24, %v662_v21  ;;  %v605_v28 = vadd.f32 %v1350_v10, %v604_v26  ;;  %v663_v30 = vpop.f32.mrf.mxu1  ;;  %v781_v35 = vpop.f32.mrf.mxu3 }
 0x144   :  { %v780_v27 = vadd.f32 %v779_v23, %v721_v25  ;;  %v664_v32 = vadd.f32 %v663_v30, %v605_v28 }
 0x146   :  { %v802_v29 = vmax.f32 %v780_v27, 0.0 }
 0x148   :  { %v822_v31 = vmin.f32 %v802_v29, 20.0 }
 0x149   :  { %v722_v33 = vpop.f32.mrf.mxu2 }
 0x14a   :  { %842 = vst [vmem:[#allocation7 + $0x90] sm:$0xff] %v822_v31  ;;  %v723_v34 = vadd.f32 %v722_v33, %v664_v32 }
 0x14c   :  { %v782_v36 = vadd.f32 %v781_v35, %v723_v34 }
 0x14e   :  { %v803_v37 = vmax.f32 %v782_v36, 0.0 }
 0x150   :  { %v823_v38 = vmin.f32 %v803_v37, 20.0 }
 0x152   :  { %843 = vst [vmem:[#allocation7 + $0x98] sm:$0xff] %v823_v38 }
 0x153   :  { %856 = dma.vmem_to_hbm [thread:$0]  %s849_s26, 2560, %s851_s29, [#allocation4], %s1311_s30, %s1311_s30, %s1312_s4  }
 0x154   :  { %1301 = dma.done.wait [#allocation4], 2560  }
 0x155   :  { %1302 = vsyncadd [#allocation4], 4294964736 }
 0x156   :  { %861 = vsyncpa [#allocation3], 1 }
 0x157   :  { %862 = vsyncpa [#allocation6], 1 }
 0x158   :  { %863 = vsyncpa [#allocation4], 1 }

</bundles_post_ra>
